<compile_context>
chip_gen: v5e
topology: v5e:2x2
jax: 0.10.0
libtpu: 0.0.40
codegen_flags: <defaults>
</compile_context>

<pallas_src>
import functools

import jax
import jax.numpy as jnp
import numpy as np
from jax.experimental import pallas as pl
from jax.experimental.pallas import tpu as pltpu

EPS = 1e-7
_MAX_TN = 4096  # events per tile cap (per-tile streamed bytes ~6.5 MB at D=32,S=5)


def _decoder_kernel(xpos_ref, xneg_ref, u_ref, v_ref, scal_ref, w_ref, out_ref,
                    *, num_surv):
    """One event tile (events on the sublane axis).

    xpos_ref : (TN, D)      z_src + z_dst
    xneg_ref : (TN, D)      z_src + z_neg
    u_ref    : (S, TN, D)   u_non_embeddings, s-major (streamed straight from HBM)
    v_ref    : (S, TN, D)   v_non_embeddings, s-major
    scal_ref : (TN, 7+S)    packed per-event scalars:
                              cols [0 : 2+S] = [t_pos, t_neg, t_surv_0..S-1]
                              col  2+S       = td_step
                              col  3+S       = et1 (1.0 where et > 0)
                              col  4+S       = psi[et]
                              col  5+S       = alpha[et]
                              col  6+S       = b[et]
    w_ref    : (2, D)       row0 = (wu_0 + wv_0), row1 = (wu_1 + wv_1) - row0
    out_ref  : (TN, 4)      [cond_pos, cond_neg, log(lam_uv+eps), integral]
    """
    S = num_surv
    scal = scal_ref[...]
    t_all = scal[:, 0:2 + S]                     # [t_pos, t_neg, t_surv...] packed
    tdstep = scal[:, 2 + S:3 + S]
    et1 = scal[:, 3 + S:4 + S]
    psi = scal[:, 4 + S:5 + S]
    alpha = scal[:, 5 + S:6 + S]
    bsel = scal[:, 6 + S:7 + S]

    w = w_ref[...]
    # Per-event folded weight row: w_sel[n, :] = (wu + wv)[et[n], :]
    #   = w0 + et1 * (w1 - w0).
    w_sel = w[0:1, :] + et1 * w[1:2, :]          # (TN, D)

    def red(x):                                  # (TN, D) -> (TN, 1)
        return jnp.sum(x * w_sel, axis=-1, keepdims=True)

    # Algebraic fold of the symmetric THP intensity:
    #   0.5*(omega_k(z_u||z_v) + omega_k(z_v||z_u)) = 0.5*(z_u+z_v)@(wu_k+wv_k) + b_k
    cols = [red(xpos_ref[...]), red(xneg_ref[...])]
    for s in range(S):                           # static unroll over survival samples
        cols.append(red(u_ref[s] + v_ref[s]))
    g = 0.5 * jnp.concatenate(cols, axis=-1) + bsel + alpha * t_all   # (TN, 2+S)

    # Same softplus-style formula as the PyTorch module; the clip at +-75 keeps
    # exp() well inside f32 range (matches torch.clamp).
    inv_psi = 1.0 / (psi + EPS)
    g_psi = jnp.clip(g * inv_psi, -75.0, 75.0)
    lam = psi * (jnp.log1p(jnp.exp(-g_psi)) + g_psi)                  # (TN, 2+S)

    lam_pos = lam[:, 0:1]
    lam_neg = lam[:, 1:2]
    integral = tdstep * jnp.sum(lam[:, 2:], axis=-1, keepdims=True)   # (TN, 1)
    surv = jnp.exp(-integral)

    out_ref[...] = jnp.concatenate(
        [lam_pos * surv,                 # cond_pos
         lam_neg * surv,                 # cond_neg
         jnp.log(lam_pos + EPS),         # per-event log(lambda_uv + eps)
         integral],                      # per-event survival integral
        axis=-1)


def _pick_tile(n_events):
    """Event-tile size (multiple of 8) and padded total, >=2 tiles once N>512."""
    n8 = ((n_events + 7) // 8) * 8
    if n8 <= 512:
        return n8, n8                             # one small tile, no split
    n_tiles = max(2, -(-n8 // _MAX_TN))
    tn = ((-(-n8 // n_tiles) + 7) // 8) * 8
    return tn, tn * n_tiles


def _maybe_buffered_spec(block_shape, index_map, n_bufs):
    """BlockSpec with deeper pipelining when available; plain spec otherwise."""
    if n_bufs <= 2:
        return pl.BlockSpec(block_shape, index_map)
    try:
        return pl.BlockSpec(block_shape, index_map,
                            pipeline_mode=pl.Buffered(n_bufs))
    except (AttributeError, TypeError):
        return pl.BlockSpec(block_shape, index_map)


def decoder_tp_accu_forward(params, state, all_embeddings, assoc, src, pos_dst,
                            last_update, cur_time,
                            u_non_embeddings, v_non_embeddings,
                            neg_dst, et, *, num_surv_samples):
    """Functional forward of DecoderTP_accu (update_accu=False, unit_sampling,
    et-path).  Returns ((loss_lambda, loss_surv, [cond_pos, cond_neg]), new_state)."""
    f32 = jnp.float32
    D = all_embeddings.shape[1]
    N = src.shape[0]
    S = int(num_surv_samples)
    # TODO(synk): num_surv_samples == 1 divides by zero (same as the PyTorch code).

    # ---------- gather / time-difference glue (plain JAX) ----------
    z_src = all_embeddings[assoc[src]].astype(f32)
    z_dst = all_embeddings[assoc[pos_dst]].astype(f32)
    z_neg = all_embeddings[assoc[neg_dst]].astype(f32)
    lu_src = last_update[assoc[src]].astype(f32)
    lu_dst = last_update[assoc[pos_dst]].astype(f32)
    lu_neg = last_update[assoc[neg_dst]].astype(f32)
    cur_time = cur_time.astype(f32)

    last_time_pos = jnp.maximum(lu_src, lu_dst)
    td_pos = cur_time - last_time_pos
    td_step = td_pos / (S - 1)                                        # (N,)
    steps = jnp.arange(S, dtype=f32)
    temporal_pos = td_pos / (last_time_pos + 1.0)                     # (N,)
    temporal_surv = (td_step[:, None] * steps[None, :]) \
        / (last_time_pos + 1.0)[:, None]                              # (N, S)

    last_time_neg = jnp.maximum(lu_src, lu_neg)
    temporal_neg = (cur_time - last_time_neg) / (last_time_neg + 1.0)  # (N,)

    et01 = (et > 0).astype(jnp.int32)
    et1 = et01.astype(f32)
    psi_sel = params["psi"].astype(f32)[et01]
    alpha_sel = params["alpha"].astype(f32)[et01]
    b_sel = params["omega_b"].astype(f32)[et01]

    W = params["omega_w"].astype(f32)                                 # (2, 2D)
    w_fold = W[:, :D] + W[:, D:]                                      # (2, D) : wu_k + wv_k
    wmat = jnp.stack([w_fold[0], w_fold[1] - w_fold[0]], axis=0)      # (2, D) : [w0, w1-w0]

    # Small per-event operands (events on the leading / sublane axis, no transposes).
    xpos = z_src + z_dst                                              # (N, D)
    xneg = z_src + z_neg                                              # (N, D)
    # Metadata-only reshapes: the big operands go to the kernel without any
    # wrapper-side add/transpose materialization.
    u3 = u_non_embeddings.astype(f32).reshape(S, N, D)                # (S, N, D)
    v3 = v_non_embeddings.astype(f32).reshape(S, N, D)                # (S, N, D)

    R = 7 + S
    scal = jnp.concatenate(
        [temporal_pos[:, None], temporal_neg[:, None], temporal_surv,  # cols 0..1+S
         td_step[:, None], et1[:, None], psi_sel[:, None],
         alpha_sel[:, None], b_sel[:, None]], axis=1)                  # (N, R)

    # ---------- tile the event axis and run ----------
    TN, Np = _pick_tile(N)
    pad = Np - N

    def pad_events(a, axis):
        # Padding copies the array; it is only triggered when N doesn't split
        # exactly into 8-aligned tiles (batch sizes that are multiples of 8
        # usually avoid it entirely).  Padded rows stay finite in-kernel and
        # are sliced off below.
        if pad == 0:
            return a
        cfg = [(0, 0)] * a.ndim
        cfg[axis] = (0, pad)
        return jnp.pad(a, cfg)

    xpos_p = pad_events(xpos, 0)
    xneg_p = pad_events(xneg, 0)
    scal_p = pad_events(scal, 0)
    u3_p = pad_events(u3, 1)
    v3_p = pad_events(v3, 1)

    n_steps = Np // TN
    big_bufs = 3 if n_steps > 1 else 2
    big_blk = 4 * S * TN * D                                          # u or v block
    small_blk = 4 * (TN * (2 * D + R + 4) + 2 * D)
    vmem_limit = int(min(48 * 2**20,
                         max(16 * 2**20,
                             2 * big_bufs * big_blk + 2 * small_blk + (4 << 20))))

    out = pl.pallas_call(
        functools.partial(_decoder_kernel, num_surv=S),
        out_shape=jax.ShapeDtypeStruct((Np, 4), f32),
        grid=(n_steps,),
        in_specs=[
            pl.BlockSpec((TN, D), lambda i: (i, 0)),                        # xpos
            pl.BlockSpec((TN, D), lambda i: (i, 0)),                        # xneg
            _maybe_buffered_spec((S, TN, D), lambda i: (0, i, 0), big_bufs),  # u
            _maybe_buffered_spec((S, TN, D), lambda i: (0, i, 0), big_bufs),  # v
            pl.BlockSpec((TN, R), lambda i: (i, 0)),                        # scal
            pl.BlockSpec((2, D), lambda i: (0, 0)),                         # weights
        ],
        out_specs=pl.BlockSpec((TN, 4), lambda i: (i, 0)),
        compiler_params=pltpu.CompilerParams(
            dimension_semantics=("parallel",),
            vmem_limit_bytes=vmem_limit),
    )(xpos_p, xneg_p, u3_p, v3_p, scal_p, wmat)

    cond_pos = out[:N, 0]
    cond_neg = out[:N, 1]
    loss_lambda = -jnp.sum(out[:N, 2]) / N
    loss_surv = jnp.sum(out[:N, 3]) / N

    # ---------- stateful buffer updates (glue; update_accu=False path) ----------
    min_dst_idx = state["min_dst_idx"]
    new_state = dict(state)
    new_state["z_last_memory"] = all_embeddings
    new_state["last_last_time"] = (state["last_last_time"]
                                   .at[src].set(lu_src)
                                   .at[pos_dst].set(lu_dst))
    new_state["event_inten_accu"] = (state["event_inten_accu"]
                                     .at[src, pos_dst - min_dst_idx].set(0.0))
    new_state["last_src"] = src
    new_state["last_dst"] = pos_dst

    cond_density = [cond_pos, cond_neg]
    return (loss_lambda, loss_surv, cond_density), new_state


# ------------------------- pure-JAX reference (sanity check) -------------------
def _thp_ref(z_u, z_v, et, temporal, W, b, psi, alpha):
    z_uv = jnp.concatenate([z_u, z_v], axis=1)
    z_vu = jnp.concatenate([z_v, z_u], axis=1)
    et01 = (et > 0).astype(jnp.int32)
    hi = jax.lax.Precision.HIGHEST

    def lin(z, k):
        return jnp.dot(z, W[k], precision=hi) + b[k]

    g_uv = jnp.where(et01 == 0, lin(z_uv, 0), lin(z_uv, 1))
    g_vu = jnp.where(et01 == 0, lin(z_vu, 0), lin(z_vu, 1))
    g = 0.5 * (g_uv + g_vu)
    psi_s = psi[et01]
    alpha_s = alpha[et01]
    g = g + alpha_s * temporal
    g_psi = jnp.clip(g / (psi_s + EPS), -75.0, 75.0)
    return psi_s * (jnp.log(1.0 + jnp.exp(-g_psi)) + g_psi)


def _reference(params, all_embeddings, assoc, src, pos_dst, last_update,
               cur_time, u_non, v_non, neg_dst, et, S):
    W, b = params["omega_w"], params["omega_b"]
    psi_p, alpha_p = params["psi"], params["alpha"]
    N = src.shape[0]

    z_src = all_embeddings[assoc[src]]
    z_dst = all_embeddings[assoc[pos_dst]]
    z_neg = all_embeddings[assoc[neg_dst]]
    lu_src = last_update[assoc[src]]
    lu_dst = last_update[assoc[pos_dst]]
    lu_neg = last_update[assoc[neg_dst]]
    last_time_pos = jnp.maximum(lu_src, lu_dst)
    td_pos = cur_time - last_time_pos
    td_step = td_pos / (S - 1)
    td_surv = jnp.arange(S, dtype=jnp.float32)[:, None] * td_step[None, :]
    temporal_pos = td_pos / (last_time_pos + 1.0)
    temporal_surv = (td_surv / (last_time_pos + 1.0)[None, :]).reshape(-1)
    last_time_neg = jnp.maximum(lu_src, lu_neg)
    temporal_neg = (cur_time - last_time_neg) / (last_time_neg + 1.0)

    lam_uv = _thp_ref(z_src, z_dst, et, temporal_pos, W, b, psi_p, alpha_p)
    lam_surv = _thp_ref(u_non, v_non, jnp.tile(et, (S,)), temporal_surv,
                        W, b, psi_p, alpha_p).reshape(S, N)
    lam_neg = _thp_ref(z_src, z_neg, et, temporal_neg, W, b, psi_p, alpha_p)
    integral = jnp.sum(td_step[None, :] * lam_surv, axis=0)
    loss_surv = jnp.sum(integral) / N
    loss_lambda = -jnp.sum(jnp.log(lam_uv + EPS)) / N
    surv = jnp.exp(-integral)
    return loss_lambda, loss_surv, lam_uv * surv, lam_neg * surv


def _run_case(key, N, n_src_nodes, n_dst_nodes, D, S):
    min_src, max_src = 0, n_src_nodes - 1
    min_dst, max_dst = n_src_nodes, n_src_nodes + n_dst_nodes - 1
    num_nodes = max_dst - min_src + 1

    ks = jax.random.split(key, 13)
    all_embeddings = jax.random.normal(ks[0], (num_nodes, D), jnp.float32)
    assoc = jnp.arange(num_nodes, dtype=jnp.int32)
    src = jax.random.randint(ks[1], (N,), min_src, max_src + 1)
    pos_dst = jax.random.randint(ks[2], (N,), min_dst, max_dst + 1)
    neg_dst = jax.random.randint(ks[3], (N,), min_dst, max_dst + 1)
    last_update = jax.random.uniform(ks[4], (num_nodes,), jnp.float32, 0.0, 10.0)
    cur_time = 10.0 + jax.random.uniform(ks[5], (N,), jnp.float32, 0.0, 1.0)
    u_non = jax.random.normal(ks[6], (S * N, D), jnp.float32)
    v_non = jax.random.normal(ks[7], (S * N, D), jnp.float32)
    et = jax.random.randint(ks[8], (N,), 0, 2)

    params = {
        "omega_w": 0.1 * jax.random.normal(ks[9], (2, 2 * D), jnp.float32),
        "omega_b": 0.05 * jax.random.normal(ks[11], (2,), jnp.float32),
        "psi": 0.5 * jnp.ones((2,), jnp.float32),
        "alpha": jax.random.uniform(ks[10], (2,), jnp.float32),
        "w_t": jax.random.uniform(ks[12], (2,), jnp.float32),  # unused on THP path
    }
    state = {
        "z_last_memory": jnp.zeros((num_nodes, D), jnp.float32),
        "last_last_time": jnp.zeros((num_nodes,), jnp.float32),
        "event_inten_accu": jnp.zeros((n_src_nodes, n_dst_nodes), jnp.float32),
        "min_dst_idx": min_dst,
    }

    (loss_lambda, loss_surv, cond), _ = decoder_tp_accu_forward(
        params, state, all_embeddings, assoc, src, pos_dst, last_update,
        cur_time, u_non, v_non, neg_dst, et, num_surv_samples=S)
    jax.block_until_ready((loss_lambda, loss_surv, cond[0], cond[1]))

    ll_ref, ls_ref, cp_ref, cn_ref = _reference(
        params, all_embeddings, assoc, src, pos_dst, last_update, cur_time,
        u_non, v_non, neg_dst, et, S)

    np.testing.assert_allclose(np.asarray(loss_lambda), np.asarray(ll_ref),
                               rtol=2e-3, atol=2e-4)
    np.testing.assert_allclose(np.asarray(loss_surv), np.asarray(ls_ref),
                               rtol=2e-3, atol=2e-4)
    np.testing.assert_allclose(np.asarray(cond[0]), np.asarray(cp_ref),
                               rtol=2e-3, atol=2e-4)
    np.testing.assert_allclose(np.asarray(cond[1]), np.asarray(cn_ref),
                               rtol=2e-3, atol=2e-4)


if __name__ == "__main__":
    D = 32   # embedding_dim
    S = 5    # num_surv_samples

    key = jax.random.PRNGKey(0)
    k_small, k_big = jax.random.split(key)

    # Small case: single tile, grid=(1,)  (N=8 events, 20 nodes).
    _run_case(k_small, N=8, n_src_nodes=10, n_dst_nodes=10, D=D, S=S)

    # Larger case: exercises the multi-tile grid (>=2 steps), the deeper
    # pipelining path, and event-axis padding (N=1037 -> two 520-event tiles).
    _run_case(k_big, N=1037, n_src_nodes=32, n_dst_nodes=64, D=D, S=S)

    print("KERNEL_OK")
</pallas_src>

<mosaic_0001>
module attributes {stable_mosaic.version = 11 : i64} {
  func.func @_decoder_kernel(%arg0: i32, %arg1: memref<8x32xf32, #tpu.memory_space<vmem>>, %arg2: memref<8x32xf32, #tpu.memory_space<vmem>>, %arg3: memref<5x8x32xf32, #tpu.memory_space<vmem>>, %arg4: memref<5x8x32xf32, #tpu.memory_space<vmem>>, %arg5: memref<8x12xf32, #tpu.memory_space<vmem>>, %arg6: memref<2x32xf32, #tpu.memory_space<vmem>>, %arg7: memref<8x4xf32, #tpu.memory_space<vmem>>) attributes {dimension_semantics = [#tpu.dimension_semantics<parallel>], iteration_bounds = array<i64: 1>, scalar_prefetch = 0 : i64, scratch_operands = 0 : i64, tpu.core_type = #tpu.core_type<tc>, window_params = [{transform_indices = @transform_0, window_bounds = array<i64: 8, 32>}, {transform_indices = @transform_1, window_bounds = array<i64: 8, 32>}, {transform_indices = @transform_2, window_bounds = array<i64: 5, 8, 32>}, {transform_indices = @transform_3, window_bounds = array<i64: 5, 8, 32>}, {transform_indices = @transform_4, window_bounds = array<i64: 8, 12>}, {pipeline_mode = #tpu.pipeline_mode<synchronous>, transform_indices = @transform_5, window_bounds = array<i64: 2, 32>}, {transform_indices = @transform_6, window_bounds = array<i64: 8, 4>}]} {
    %c0 = arith.constant 0 : index
    %c0_0 = arith.constant 0 : index
    %0 = vector.load %arg5[%c0, %c0_0] : memref<8x12xf32, #tpu.memory_space<vmem>>, vector<8x12xf32>
    %1 = vector.extract_strided_slice %0 {offsets = [0, 0], sizes = [8, 7], strides = [1, 1]} : vector<8x12xf32> to vector<8x7xf32>
    %2 = vector.extract_strided_slice %0 {offsets = [0, 7], sizes = [8, 1], strides = [1, 1]} : vector<8x12xf32> to vector<8x1xf32>
    %3 = vector.extract_strided_slice %0 {offsets = [0, 8], sizes = [8, 1], strides = [1, 1]} : vector<8x12xf32> to vector<8x1xf32>
    %4 = vector.extract_strided_slice %0 {offsets = [0, 9], sizes = [8, 1], strides = [1, 1]} : vector<8x12xf32> to vector<8x1xf32>
    %5 = vector.extract_strided_slice %0 {offsets = [0, 10], sizes = [8, 1], strides = [1, 1]} : vector<8x12xf32> to vector<8x1xf32>
    %6 = vector.extract_strided_slice %0 {offsets = [0, 11], sizes = [8, 1], strides = [1, 1]} : vector<8x12xf32> to vector<8x1xf32>
    %c0_1 = arith.constant 0 : index
    %c0_2 = arith.constant 0 : index
    %7 = vector.load %arg6[%c0_1, %c0_2] : memref<2x32xf32, #tpu.memory_space<vmem>>, vector<2x32xf32>
    %8 = vector.extract_strided_slice %7 {offsets = [0, 0], sizes = [1, 32], strides = [1, 1]} : vector<2x32xf32> to vector<1x32xf32>
    %9 = vector.extract_strided_slice %7 {offsets = [1, 0], sizes = [1, 32], strides = [1, 1]} : vector<2x32xf32> to vector<1x32xf32>
    %10 = vector.broadcast %3 : vector<8x1xf32> to vector<8x32xf32>
    %11 = vector.broadcast %9 : vector<1x32xf32> to vector<8x32xf32>
    %12 = arith.mulf %10, %11 : vector<8x32xf32>
    %13 = vector.broadcast %8 : vector<1x32xf32> to vector<8x32xf32>
    %14 = arith.addf %13, %12 : vector<8x32xf32>
    %c0_3 = arith.constant 0 : index
    %c0_4 = arith.constant 0 : index
    %15 = vector.load %arg1[%c0_3, %c0_4] : memref<8x32xf32, #tpu.memory_space<vmem>>, vector<8x32xf32>
    %16 = arith.mulf %15, %14 : vector<8x32xf32>
    %cst = arith.constant dense<0.000000e+00> : vector<8xf32>
    %17 = vector.multi_reduction <add>, %16, %cst [1] : vector<8x32xf32> to vector<8xf32>
    %18 = vector.shape_cast %17 : vector<8xf32> to vector<8x1xf32>
    %c0_5 = arith.constant 0 : index
    %c0_6 = arith.constant 0 : index
    %19 = vector.load %arg2[%c0_5, %c0_6] : memref<8x32xf32, #tpu.memory_space<vmem>>, vector<8x32xf32>
    %20 = arith.mulf %19, %14 : vector<8x32xf32>
    %cst_7 = arith.constant dense<0.000000e+00> : vector<8xf32>
    %21 = vector.multi_reduction <add>, %20, %cst_7 [1] : vector<8x32xf32> to vector<8xf32>
    %22 = vector.shape_cast %21 : vector<8xf32> to vector<8x1xf32>
    %c0_8 = arith.constant 0 : index
    %c0_9 = arith.constant 0 : index
    %c0_10 = arith.constant 0 : index
    %23 = vector.load %arg3[%c0_8, %c0_9, %c0_10] : memref<5x8x32xf32, #tpu.memory_space<vmem>>, vector<1x8x32xf32>
    %24 = vector.shape_cast %23 : vector<1x8x32xf32> to vector<8x32xf32>
    %c0_11 = arith.constant 0 : index
    %c0_12 = arith.constant 0 : index
    %c0_13 = arith.constant 0 : index
    %25 = vector.load %arg4[%c0_11, %c0_12, %c0_13] : memref<5x8x32xf32, #tpu.memory_space<vmem>>, vector<1x8x32xf32>
    %26 = vector.shape_cast %25 : vector<1x8x32xf32> to vector<8x32xf32>
    %27 = arith.addf %24, %26 : vector<8x32xf32>
    %28 = arith.mulf %27, %14 : vector<8x32xf32>
    %cst_14 = arith.constant dense<0.000000e+00> : vector<8xf32>
    %29 = vector.multi_reduction <add>, %28, %cst_14 [1] : vector<8x32xf32> to vector<8xf32>
    %30 = vector.shape_cast %29 : vector<8xf32> to vector<8x1xf32>
    %c1 = arith.constant 1 : index
    %c0_15 = arith.constant 0 : index
    %c0_16 = arith.constant 0 : index
    %31 = vector.load %arg3[%c1, %c0_15, %c0_16] : memref<5x8x32xf32, #tpu.memory_space<vmem>>, vector<1x8x32xf32>
    %32 = vector.shape_cast %31 : vector<1x8x32xf32> to vector<8x32xf32>
    %c1_17 = arith.constant 1 : index
    %c0_18 = arith.constant 0 : index
    %c0_19 = arith.constant 0 : index
    %33 = vector.load %arg4[%c1_17, %c0_18, %c0_19] : memref<5x8x32xf32, #tpu.memory_space<vmem>>, vector<1x8x32xf32>
    %34 = vector.shape_cast %33 : vector<1x8x32xf32> to vector<8x32xf32>
    %35 = arith.addf %32, %34 : vector<8x32xf32>
    %36 = arith.mulf %35, %14 : vector<8x32xf32>
    %cst_20 = arith.constant dense<0.000000e+00> : vector<8xf32>
    %37 = vector.multi_reduction <add>, %36, %cst_20 [1] : vector<8x32xf32> to vector<8xf32>
    %38 = vector.shape_cast %37 : vector<8xf32> to vector<8x1xf32>
    %c2 = arith.constant 2 : index
    %c0_21 = arith.constant 0 : index
    %c0_22 = arith.constant 0 : index
    %39 = vector.load %arg3[%c2, %c0_21, %c0_22] : memref<5x8x32xf32, #tpu.memory_space<vmem>>, vector<1x8x32xf32>
    %40 = vector.shape_cast %39 : vector<1x8x32xf32> to vector<8x32xf32>
    %c2_23 = arith.constant 2 : index
    %c0_24 = arith.constant 0 : index
    %c0_25 = arith.constant 0 : index
    %41 = vector.load %arg4[%c2_23, %c0_24, %c0_25] : memref<5x8x32xf32, #tpu.memory_space<vmem>>, vector<1x8x32xf32>
    %42 = vector.shape_cast %41 : vector<1x8x32xf32> to vector<8x32xf32>
    %43 = arith.addf %40, %42 : vector<8x32xf32>
    %44 = arith.mulf %43, %14 : vector<8x32xf32>
    %cst_26 = arith.constant dense<0.000000e+00> : vector<8xf32>
    %45 = vector.multi_reduction <add>, %44, %cst_26 [1] : vector<8x32xf32> to vector<8xf32>
    %46 = vector.shape_cast %45 : vector<8xf32> to vector<8x1xf32>
    %c3 = arith.constant 3 : index
    %c0_27 = arith.constant 0 : index
    %c0_28 = arith.constant 0 : index
    %47 = vector.load %arg3[%c3, %c0_27, %c0_28] : memref<5x8x32xf32, #tpu.memory_space<vmem>>, vector<1x8x32xf32>
    %48 = vector.shape_cast %47 : vector<1x8x32xf32> to vector<8x32xf32>
    %c3_29 = arith.constant 3 : index
    %c0_30 = arith.constant 0 : index
    %c0_31 = arith.constant 0 : index
    %49 = vector.load %arg4[%c3_29, %c0_30, %c0_31] : memref<5x8x32xf32, #tpu.memory_space<vmem>>, vector<1x8x32xf32>
    %50 = vector.shape_cast %49 : vector<1x8x32xf32> to vector<8x32xf32>
    %51 = arith.addf %48, %50 : vector<8x32xf32>
    %52 = arith.mulf %51, %14 : vector<8x32xf32>
    %cst_32 = arith.constant dense<0.000000e+00> : vector<8xf32>
    %53 = vector.multi_reduction <add>, %52, %cst_32 [1] : vector<8x32xf32> to vector<8xf32>
    %54 = vector.shape_cast %53 : vector<8xf32> to vector<8x1xf32>
    %c4 = arith.constant 4 : index
    %c0_33 = arith.constant 0 : index
    %c0_34 = arith.constant 0 : index
    %55 = vector.load %arg3[%c4, %c0_33, %c0_34] : memref<5x8x32xf32, #tpu.memory_space<vmem>>, vector<1x8x32xf32>
    %56 = vector.shape_cast %55 : vector<1x8x32xf32> to vector<8x32xf32>
    %c4_35 = arith.constant 4 : index
    %c0_36 = arith.constant 0 : index
    %c0_37 = arith.constant 0 : index
    %57 = vector.load %arg4[%c4_35, %c0_36, %c0_37] : memref<5x8x32xf32, #tpu.memory_space<vmem>>, vector<1x8x32xf32>
    %58 = vector.shape_cast %57 : vector<1x8x32xf32> to vector<8x32xf32>
    %59 = arith.addf %56, %58 : vector<8x32xf32>
    %60 = arith.mulf %59, %14 : vector<8x32xf32>
    %cst_38 = arith.constant dense<0.000000e+00> : vector<8xf32>
    %61 = vector.multi_reduction <add>, %60, %cst_38 [1] : vector<8x32xf32> to vector<8xf32>
    %62 = vector.shape_cast %61 : vector<8xf32> to vector<8x1xf32>
    %63 = tpu.concatenate %18, %22, %30, %38, %46, %54, %62 in 1 : vector<8x1xf32>, vector<8x1xf32>, vector<8x1xf32>, vector<8x1xf32>, vector<8x1xf32>, vector<8x1xf32>, vector<8x1xf32> -> vector<8x7xf32>
    %cst_39 = arith.constant 5.000000e-01 : f32
    %64 = vector.broadcast %cst_39 : f32 to vector<8x7xf32>
    %65 = arith.mulf %64, %63 : vector<8x7xf32>
    %66 = vector.broadcast %6 : vector<8x1xf32> to vector<8x7xf32>
    %67 = arith.addf %65, %66 : vector<8x7xf32>
    %68 = vector.broadcast %5 : vector<8x1xf32> to vector<8x7xf32>
    %69 = arith.mulf %68, %1 : vector<8x7xf32>
    %70 = arith.addf %67, %69 : vector<8x7xf32>
    %cst_40 = arith.constant 1.000000e-07 : f32
    %71 = vector.broadcast %cst_40 : f32 to vector<8x1xf32>
    %72 = arith.addf %4, %71 : vector<8x1xf32>
    %cst_41 = arith.constant 1.000000e+00 : f32
    %73 = vector.broadcast %cst_41 : f32 to vector<8x1xf32>
    %74 = arith.divf %73, %72 : vector<8x1xf32>
    %75 = vector.broadcast %74 : vector<8x1xf32> to vector<8x7xf32>
    %76 = arith.mulf %70, %75 : vector<8x7xf32>
    %cst_42 = arith.constant -7.500000e+01 : f32
    %cst_43 = arith.constant 7.500000e+01 : f32
    %77 = vector.broadcast %cst_42 : f32 to vector<8x7xf32>
    %78 = arith.maximumf %77, %76 : vector<8x7xf32>
    %79 = vector.broadcast %cst_43 : f32 to vector<8x7xf32>
    %80 = arith.minimumf %79, %78 : vector<8x7xf32>
    %cst_44 = arith.constant 0.000000e+00 : f32
    %81 = vector.broadcast %cst_44 : f32 to vector<8x7xf32>
    %82 = arith.subf %81, %80 : vector<8x7xf32>
    %83 = math.exp %82 : vector<8x7xf32>
    %84 = math.log1p %83 : vector<8x7xf32>
    %85 = arith.addf %84, %80 : vector<8x7xf32>
    %86 = vector.broadcast %4 : vector<8x1xf32> to vector<8x7xf32>
    %87 = arith.mulf %86, %85 : vector<8x7xf32>
    %88 = vector.extract_strided_slice %87 {offsets = [0, 0], sizes = [8, 1], strides = [1, 1]} : vector<8x7xf32> to vector<8x1xf32>
    %89 = vector.extract_strided_slice %87 {offsets = [0, 1], sizes = [8, 1], strides = [1, 1]} : vector<8x7xf32> to vector<8x1xf32>
    %90 = vector.extract_strided_slice %87 {offsets = [0, 2], sizes = [8, 5], strides = [1, 1]} : vector<8x7xf32> to vector<8x5xf32>
    %cst_45 = arith.constant dense<0.000000e+00> : vector<8xf32>
    %91 = vector.multi_reduction <add>, %90, %cst_45 [1] : vector<8x5xf32> to vector<8xf32>
    %92 = vector.shape_cast %91 : vector<8xf32> to vector<8x1xf32>
    %93 = arith.mulf %2, %92 : vector<8x1xf32>
    %cst_46 = arith.constant 0.000000e+00 : f32
    %94 = vector.broadcast %cst_46 : f32 to vector<8x1xf32>
    %95 = arith.subf %94, %93 : vector<8x1xf32>
    %96 = math.exp %95 : vector<8x1xf32>
    %97 = arith.mulf %88, %96 : vector<8x1xf32>
    %98 = arith.mulf %89, %96 : vector<8x1xf32>
    %cst_47 = arith.constant 1.000000e-07 : f32
    %99 = vector.broadcast %cst_47 : f32 to vector<8x1xf32>
    %100 = arith.addf %88, %99 : vector<8x1xf32>
    %101 = math.log %100 : vector<8x1xf32>
    %102 = tpu.concatenate %97, %98, %101, %93 in 1 : vector<8x1xf32>, vector<8x1xf32>, vector<8x1xf32>, vector<8x1xf32> -> vector<8x4xf32>
    %c0_48 = arith.constant 0 : index
    %c0_49 = arith.constant 0 : index
    %103 = vector.load %arg7[%c0_48, %c0_49] : memref<8x4xf32, #tpu.memory_space<vmem>>, vector<8x4xf32>
    tpu.vector_store %arg7[%c0_48, %c0_49], %102 {strides = array<i32>} : memref<8x4xf32, #tpu.memory_space<vmem>>, vector<8x4xf32>,
    return
  }
  func.func @transform_0(%arg0: i32) -> (i32, i32) {
    %c0_i32 = arith.constant 0 : i32
    %c0_i32_0 = arith.constant 0 : i32
    return %arg0, %c0_i32 : i32, i32
  }
  func.func @transform_1(%arg0: i32) -> (i32, i32) {
    %c0_i32 = arith.constant 0 : i32
    %c0_i32_0 = arith.constant 0 : i32
    return %arg0, %c0_i32 : i32, i32
  }
  func.func @transform_2(%arg0: i32) -> (i32, i32, i32) {
    %c0_i32 = arith.constant 0 : i32
    %c0_i32_0 = arith.constant 0 : i32
    %c0_i32_1 = arith.constant 0 : i32
    return %c0_i32, %arg0, %c0_i32_0 : i32, i32, i32
  }
  func.func @transform_3(%arg0: i32) -> (i32, i32, i32) {
    %c0_i32 = arith.constant 0 : i32
    %c0_i32_0 = arith.constant 0 : i32
    %c0_i32_1 = arith.constant 0 : i32
    return %c0_i32, %arg0, %c0_i32_0 : i32, i32, i32
  }
  func.func @transform_4(%arg0: i32) -> (i32, i32) {
    %c0_i32 = arith.constant 0 : i32
    %c0_i32_0 = arith.constant 0 : i32
    return %arg0, %c0_i32 : i32, i32
  }
  func.func @transform_5(%arg0: i32) -> (i32, i32) {
    %c0_i32 = arith.constant 0 : i32
    %c0_i32_0 = arith.constant 0 : i32
    %c0_i32_1 = arith.constant 0 : i32
    return %c0_i32, %c0_i32_0 : i32, i32
  }
  func.func @transform_6(%arg0: i32) -> (i32, i32) {
    %c0_i32 = arith.constant 0 : i32
    %c0_i32_0 = arith.constant 0 : i32
    return %arg0, %c0_i32 : i32, i32
  }
}

</mosaic_0001>

<bundles_post_ra>
// kernel: tpu_custom_call.1
= control target key start
LH: loop header
LB: loop body
LE: loop exit
PB: predicated region body
PF: predicated region fallthrough
CT: control target
= control target key end

     0   :  { %11 = vsyncpa [#allocation3], 0  ;;  %s525_s0 = inlined_call_operand.hbm [shape: f32[8,32], index: 0, kind: input, shape index: {}]   ;;  %s526_s1 = inlined_call_operand.hbm [shape: f32[8,32], index: 1, kind: input, shape index: {}]   ;;  %s527_s2 = inlined_call_operand.hbm [shape: f32[5,8,32], index: 2, kind: input, shape index: {}]   ;;  %s528_s3 = inlined_call_operand.hbm [shape: f32[5,8,32], index: 3, kind: input, shape index: {}]   ;;  %s529_s4 = inlined_call_operand.hbm [shape: f32[8,12], index: 4, kind: input, shape index: {}]   ;;  %s530_s5 = inlined_call_operand.vmem [shape: f32[2,32], index: 5, kind: input, shape index: {}]   ;;  %s531_s6 = inlined_call_operand.vmem [shape: f32[8,4], index: 6, kind: output, shape index: {}]  }
   0x1   :  { %12 = vsyncpa [#allocation5], 0  ;;  %s30_s23 = sshll.u32 %s526_s1, 4  ;;  %s31_s23 = int_to_ptr.hbm [resolvable:$true] %s30_s23 }
   0x2   :  { %13 = vsyncpa [#allocation8], 0  ;;  %s427_s24 = smov [#allocation4]   ;;  %s53_s28 = sshll.u32 %s528_s3, 4  ;;  %s54_s28 = int_to_ptr.hbm [resolvable:$true] %s53_s28 }
   0x3   :  { %s32_s25 = sshll.u32 %s427_s24, 4  ;;  %s428_s29 = smov [#allocation7]   ;;  %s33_s25 = int_to_ptr.vmem [resolvable:$true] %s32_s25 }
   0x4   :  { %35 = dma.hbm_to_vmem [thread:$0]  %s31_s23, 128, %s33_s25, [#allocation5]  }
   0x5   :  { %s55_s30 = sshll.u32 %s428_s29, 4  ;;  %s19_s9 = sshll.u32 %s525_s0, 4  ;;  %s56_s30 = int_to_ptr.vmem [resolvable:$true] %s55_s30  ;;  %s20_s9 = int_to_ptr.hbm [resolvable:$true] %s19_s9 }
   0x6   :  { %s429_s1 = smov 128   ;;  %s430_s10 = smov 8  }
   0x7   :  { %61 = dma.hbm_to_vmem [thread:$0]  %s54_s28, 640, %s56_s30, [#allocation8], %s429_s1, %s429_s1, %s430_s10  }
   0x8   :  { %s40_s13 = sshll.u32 %s527_s2, 4  ;;  %s431_s14 = smov [#allocation2]   ;;  %s41_s13 = int_to_ptr.hbm [resolvable:$true] %s40_s13 }
   0x9   :  { %s21_s15 = sshll.u32 %s431_s14, 4  ;;  %s432_s3 = smov [#allocation6]   ;;  %s22_s15 = int_to_ptr.vmem [resolvable:$true] %s21_s15 }
   0xa   :  { %24 = dma.hbm_to_vmem [thread:$0]  %s20_s9, 128, %s22_s15, [#allocation3]  }
   0xb   :  { %s42_s16 = sshll.u32 %s432_s3, 4  ;;  %s67_s0 = sshll.u32 %s529_s4, 4  ;;  %s43_s16 = int_to_ptr.vmem [resolvable:$true] %s42_s16  ;;  %s68_s0 = int_to_ptr.hbm [resolvable:$true] %s67_s0 }
   0xc   :  { %48 = dma.hbm_to_vmem [thread:$0]  %s41_s13, 640, %s43_s16, [#allocation5], %s429_s1, %s429_s1, %s430_s10  }
   0xd   :  { %s433_s19 = smov [#allocation9]  }
   0xe   :  { %s69_s20 = sshll.u32 %s433_s19, 4  ;;  %s70_s20 = int_to_ptr.vmem [resolvable:$true] %s69_s20 }
   0xf   :  { %72 = dma.hbm_to_vmem [thread:$0]  %s68_s0, 128, %s70_s20, [#allocation8]  }
  0x10   :  { %421 = dma.done.wait [#allocation3], 128  }
  0x11   :  { %422 = vsyncadd [#allocation3], 4294967168 }
  0x12   :  { %423 = dma.done.wait [#allocation5], 768  }
  0x13   :  { %424 = vsyncadd [#allocation5], 4294966528 }
  0x14   :  { %425 = dma.done.wait [#allocation8], 768  }
  0x15   :  { %426 = vsyncadd [#allocation8], 4294966528  ;;  %v434_v0 = vmov 8   ;;  %v435_v1 = vmov 11   ;;  %v436_v2 = vmov 10   ;;  %v493_v3 = vld [vmem:[#allocation9] sm:$0xff] }
  0x16   :  { %285 = vset.pattern.permute.xlu0 %v434_v0  ;;  %286 = vset.pattern.permute.xlu1 %v435_v1  ;;  %v437_v4 = vmov 9   ;;  %v96_v5 = vld [vmem:[%s530_s5] sm:$0x3]  ;;  %v125_v7 = vld [vmem:[#allocation6 + $0x8] sm:$0xff]  ;;  %v112_v13 = vld [vmem:[#allocation4] sm:$0xff]  ;;  %vm108_vm0 = vcmask 261120  }
  0x17   :  { %287 = vset.pattern.permute.xlu2 %v436_v2  ;;  %99 = vperm.xlu0 %285, %v493_v3   ;;  %v102_v6 = vperm.slane %v96_v5, 1  ;;  %v127_v8 = vld [vmem:[#allocation7 + $0x8] sm:$0xff]  ;;  %v104_v9 = vperm.slane %v96_v5, 0  ;;  %v136_v17 = vld [vmem:[#allocation7 + $0x10] sm:$0xff]  ;;  %v117_v18 = vld [vmem:[#allocation6] sm:$0xff]  ;;  %vm160_vm5 = vcmask 7168  }
  0x18   :  { %174 = vperm.xlu1 %286, %v493_v3   ;;  %179 = vperm.xlu2 %287, %v493_v3   ;;  %v128_v12 = vadd.f32 %v127_v8, %v125_v7  ;;  %v106_v14 = vld [vmem:[#allocation2] sm:$0xff]  ;;  %v118_v19 = vld [vmem:[#allocation7] sm:$0xff]  ;;  %v152_v30 = vld [vmem:[#allocation6 + $0x20] sm:$0xff]  ;;  %v184_v34 = vadd.f32 1e-07, %v493_v3  ;;  %vm162_vm6 = vcmask 15360  }
  0x19   :  { %v134_v16 = vld [vmem:[#allocation6 + $0x10] sm:$0xff]  ;;  %v119_v27 = vadd.f32 %v118_v19, %v117_v18  ;;  %v154_v31 = vld [vmem:[#allocation7 + $0x20] sm:$0xff]  ;;  %v143_v32 = vld [vmem:[#allocation6 + $0x18] sm:$0xff]  ;;  %vm164_vm7 = vcmask 23552   ;;  %vm166_vm8 = vcmask 31744   ;;  %vm168_vm9 = vcmask 39936  }
  0x1a   :  { %v137_v23 = vadd.f32 %v136_v17, %v134_v16  ;;  %v145_v33 = vld [vmem:[#allocation7 + $0x18] sm:$0xff]  ;;  %v155_v37 = vadd.f32 %v154_v31, %v152_v30  ;;  %291 = vrcp.f32 %v184_v34  ;;  %vm190_vm1 = vweird.f32 %v184_v34  ;;  %s438_s5 = smov 126   ;;  %s439_s21 = smov 2  }
  0x1b   :  { %v146_v38 = vadd.f32 %v145_v33, %v143_v32  ;;  %v196_v47 = vand.u32 2147483648, %v184_v34  ;;  %v194_v49 = vand.u32 2147483647, %v184_v34  ;;  %vm170_vm10 = vcmask 48128   ;;  %s440_s22 = smov 121   ;;  %s441_s23 = smov 122  }
  0x1c   :  { %s442_s24 = smov 124  }
  0x1d   :  { %v197_v50 = vor.u32 1.1754944e-38, %v196_v47  ;;  %vm195_vm4 = vcmp.eq.f32.partialorder %v194_v49, 8.507059e+37 }
  0x1f   :  { %290 = vset.pattern.permute.xlu0 %v437_v4 }
  0x20   :  { %288 = vset.pattern.permute.xlu2 %v437_v4  ;;  %289 = vset.pattern.permute.xlu1 %v437_v4  ;;  %v292_v41 = vpop.eup %291 }
  0x21   :  { %v186_v44 = vmul.f32 %v292_v41, %v184_v34  ;;  %vm191_vm2 = vweird.f32 %v292_v41 }
  0x22   :  { %vm192_vm3 = vmor %vm190_vm1, %vm191_vm2 }
  0x23   :  { %v187_v45 = vsub.f32 1.0, %v186_v44 }
  0x25   :  { %v188_v46 = vmul.f32 %v292_v41, %v187_v45 }
  0x27   :  { %v189_v48 = vadd.f32 %v292_v41, %v188_v46 }
  0x29   :  { %v193_v51 = vsel %vm192_vm3, %v292_v41, %v189_v48 }
  0x2a   :  { %v198_v52 = vsel %vm195_vm4, %v197_v50, %v193_v51 }
  0x72   :  { %v180_v53 = vpop.permute.xlu2 %179 }
  0x89   :  { %v100_v10 = vpop.permute.xlu0 %99 }
  0x8a   :  { %v103_v11 = vmul.f32 %v102_v6, %v100_v10  ;;  %v175_v54 = vpop.permute.xlu1 %174  ;;  %v182_v6 = vmul.f32 %v180_v53, %v493_v3 }
  0x8c   :  { %v105_v15 = vadd.f32 %v104_v9, %v103_v11 }
  0x8e   :  { %v129_v20 = vmul.f32 %v128_v12, %v105_v15  ;;  %v113_v21 = vmul.f32 %v112_v13, %v105_v15  ;;  %v107_v22 = vmul.f32 %v106_v14, %v105_v15  ;;  %v138_v28 = vmul.f32 %v137_v23, %v105_v15 }
  0x8f   :  { %v120_v29 = vmul.f32 %v119_v27, %v105_v15  ;;  %v156_v39 = vmul.f32 %v155_v37, %v105_v15  ;;  %v147_v40 = vmul.f32 %v146_v38, %v105_v15 }
  0x90   :  { %v130_v24 = vsel %vm108_vm0, %v129_v20, 0.0  ;;  %v114_v25 = vsel %vm108_vm0, %v113_v21, 0.0  ;;  %v109_v26 = vsel %vm108_vm0, %v107_v22, 0.0  ;;  %v139_v35 = vsel %vm108_vm0, %v138_v28, 0.0 }
  0x91   :  { %131 = vadd.xlane.f32.xlu2 %v130_v24  ;;  %115 = vadd.xlane.f32.xlu1 %v114_v25  ;;  %v121_v36 = vsel %vm108_vm0, %v120_v29, 0.0  ;;  %v157_v42 = vsel %vm108_vm0, %v156_v39, 0.0  ;;  %v148_v43 = vsel %vm108_vm0, %v147_v40, 0.0 }
  0x92   :  { %110 = vadd.xlane.f32.xlu0 %v109_v26 }
  0x99   :  { %140 = vadd.xlane.f32.xlu2 %v139_v35  ;;  %122 = vadd.xlane.f32.xlu1 %v121_v36 }
  0xa1   :  { %158 = vadd.xlane.f32.xlu2 %v157_v42  ;;  %149 = vadd.xlane.f32.xlu1 %v148_v43 }
  0xb9   :  { %202 = vperm.xlu2 %288, %v198_v52  }
  0xba   :  { %222 = vperm.xlu1 %289, %v493_v3  }
 0x104   :  { %v132_v55 = vpop.xlane.xlu2 %131  ;;  %v116_v56 = vpop.xlane.xlu1 %115 }
 0x105   :  { %v111_v57 = vpop.xlane.xlu0 %110 }
 0x106   :  { %v161_v60 = vsel %vm160_vm5, %v111_v57, %v116_v56 }
 0x10c   :  { %v141_v58 = vpop.xlane.xlu2 %140  ;;  %v123_v59 = vpop.xlane.xlu1 %122 }
 0x10d   :  { %v163_v61 = vsel %vm162_vm6, %v161_v60, %v123_v59 }
 0x10e   :  { %v165_v62 = vsel %vm164_vm7, %v163_v61, %v132_v55 }
 0x10f   :  { %v167_v1 = vsel %vm166_vm8, %v165_v62, %v141_v58 }
 0x114   :  { %v159_v63 = vpop.xlane.xlu2 %158  ;;  %v150_v0 = vpop.xlane.xlu1 %149 }
 0x115   :  { %v169_v2 = vsel %vm168_vm9, %v167_v1, %v150_v0 }
 0x116   :  { %v171_v4 = vsel %vm170_vm10, %v169_v2, %v159_v63 }
 0x117   :  { %v172_v5 = vmul.f32 0.5, %v171_v4 }
 0x119   :  { %v177_v7 = vadd.f32 %v175_v54, %v172_v5 }
 0x11b   :  { %v183_v8 = vadd.f32 %v182_v6, %v177_v7 }
 0x11c   :  { %v203_v9 = vpop.permute.xlu2 %202 }
 0x11d   :  { %v205_v10 = vmul.f32 %v203_v9, %v183_v8 }
 0x11f   :  { %v268_v11 = vclamps-f32 %v205_v10, 75.0 }
 0x121   :  { %v208_v12 = vsub.f32 0.0, %v268_v11 }
 0x123   :  { %v209_v13 = vmul.f32 1.442695, %v208_v12 }
 0x125   :  { %293 = vpow2.f32 %v209_v13 }
 0x12b   :  { %v294_v14 = vpop.eup %293 }
 0x12c   :  { %v211_v15 = vadd.f32 1.0, %v294_v14  ;;  %v214_v16 = vmul.f32 -0.5, %v294_v14  ;;  %v217_v18 = vand.u32 2147483647, %v294_v14  ;;  %v223_v22 = vpop.permute.xlu1 %222 }
 0x12e   :  { %295 = vlog2.f32 %v211_v15  ;;  %v215_v17 = vadd.f32 1.0, %v214_v16  ;;  %vm218_vm11 = vcmp.lt.f32.partialorder %v217_v18, 0.0004427343 }
 0x130   :  { %v216_v21 = vmul.f32 %v294_v14, %v215_v17 }
 0x134   :  { %v296_v19 = vpop.eup %295 }
 0x135   :  { %v213_v20 = vmul.f32 0.6931472, %v296_v19 }
 0x137   :  { %v219_v23 = vsel %vm218_vm11, %v216_v21, %v213_v20 }
 0x138   :  { %v220_v24 = vadd.f32 %v268_v11, %v219_v23 }
 0x13a   :  { %v225_v25 = vmul.f32 %v223_v22, %v220_v24 }
 0x13c   :  { %227 = vrot.lane.b32.xlu0 %v225_v25, %s438_s5  ;;  %v246_v26 = vadd.f32 1e-07, %v225_v25 }
 0x13e   :  { %297 = vlog2.f32 %v246_v26 }
 0x144   :  { %v298_v27 = vpop.eup %297 }
 0x145   :  { %v248_v28 = vmul.f32 0.6931472, %v298_v27 }
 0x147   :  { %250 = vrot.lane.b32.xlu0 %v248_v28, %s439_s21 }
 0x1ae   :  { %v228_v29 = vpop.permute.xlu0 %227 }
 0x1af   :  { %v230_v30 = vsel %vm168_vm9, %v228_v29, 0.0 }
 0x1b0   :  { %231 = vadd.xlane.f32.xlu2 %v230_v30 }
 0x1b9   :  { %v251_v41 = vpop.permute.xlu0 %250 }
 0x223   :  { %v232_v31 = vpop.xlane.xlu2 %231 }
 0x224   :  { %v233_v32 = vmul.f32 %v232_v31, %v493_v3 }
 0x226   :  { %v234_v33 = vsub.f32 0.0, %v233_v32 }
 0x228   :  { %v235_v34 = vmul.f32 1.442695, %v234_v33 }
 0x22a   :  { %299 = vpow2.f32 %v235_v34 }
 0x230   :  { %v300_v35 = vpop.eup %299 }
 0x231   :  { %238 = vrot.lane.b32.xlu1 %v300_v35, %s440_s22 }
 0x239   :  { %242 = vrot.lane.b32.xlu1 %v300_v35, %s441_s23 }
 0x241   :  { %254 = vrot.lane.b32.xlu1 %v233_v32, %s442_s24 }
 0x2a3   :  { %v239_v36 = vpop.permute.xlu1 %238 }
 0x2a4   :  { %v241_v39 = vmul.f32 %v239_v36, %v225_v25 }
 0x2ab   :  { %v243_v37 = vpop.permute.xlu1 %242 }
 0x2ac   :  { %v245_v38 = vmul.f32 %v243_v37, %v225_v25 }
 0x2ae   :  { %v257_v40 = vsel %vm160_vm5, %v241_v39, %v245_v38 }
 0x2af   :  { %v258_v3 = vsel %vm162_vm6, %v257_v40, %v251_v41 }
 0x2b3   :  { %v255_v42 = vpop.permute.xlu1 %254 }
 0x2b4   :  { %v259_v43 = vsel %vm164_vm7, %v258_v3, %v255_v42 }
 0x2b5   :  { %260 = vst.msk [vmem:[%s531_s6] sm:$0xff] %vm166_vm8, %v259_v43 }
 0x2b6   :  { %265 = vsyncpa [#allocation3], 1 }
 0x2b7   :  { %266 = vsyncpa [#allocation5], 1 }
 0x2b8   :  { %267 = vsyncpa [#allocation8], 1 }

</bundles_post_ra>
